<compile_context>
chip_gen: v7x
topology: tpu7x:2x2x1
jax: 0.10.0
libtpu: 0.0.40
codegen_flags: <defaults>
</compile_context>

<pallas_src>
import functools

import jax
import jax.numpy as jnp
from jax.experimental import pallas as pl
from jax.experimental.pallas import tpu as pltpu

_MiB = 1024 * 1024


def _rmsnorm_kernel(x_ref, w_ref, o_ref, *, eps: float, inv_d: float):
    # x_ref: (row_tile, d_model) in I/O dtype
    # w_ref: (1, d_model) fp32 (pre-cast in wrapper, constant across grid steps)
    # o_ref: (row_tile, d_model) in I/O dtype
    x = x_ref[...].astype(jnp.float32)
    ms = jnp.sum(x * x, axis=-1, keepdims=True) * inv_d   # mean of squares (fp32)
    inv = jax.lax.rsqrt(ms + eps)
    # Re-read x_ref for the output path so the fp32 copy of the whole tile is
    # not kept live across the reduction (upcast fuses into the store pipeline).
    o_ref[...] = (x_ref[...].astype(jnp.float32) * inv * w_ref[...]).astype(o_ref.dtype)


def _round_up(a: int, b: int) -> int:
    return (a + b - 1) // b * b


def _cdiv(a: int, b: int) -> int:
    return -(-a // b)


def _tpu_budget():
    """Return (physical VMEM bytes per TensorCore, TensorCores per chip)."""
    vmem_cap = 64 * _MiB           # conservative default (v7x-sized)
    try:
        info = pltpu.get_tpu_info()
        cap = getattr(info, "vmem_capacity_bytes", None)
        if cap:
            vmem_cap = int(cap)
    except Exception:
        pass
    num_cores = 1
    try:
        info = pltpu.get_tpu_info()
        for attr in ("num_cores", "num_tensorcores", "tensorcores_per_chip"):
            v = getattr(info, attr, None)
            if v:
                num_cores = int(v)
                break
        else:
            # Heuristic: 64 MiB-per-TC parts (v7x) have 2 TCs per chip.
            num_cores = 2 if vmem_cap <= 64 * _MiB else 1
    except Exception:
        num_cores = 2 if vmem_cap <= 64 * _MiB else 1
    return vmem_cap, max(1, num_cores)


def rmsnorm(x: jax.Array, weight: jax.Array, eps: float = 1e-5,
            row_tile: int | None = None) -> jax.Array:
    """RMSNorm over the last axis of x, scaled by `weight` (shape (d_model,))."""
    orig_shape = x.shape
    d_model = orig_shape[-1]
    rows = 1
    for s in orig_shape[:-1]:
        rows *= s

    x2d = x.reshape(rows, d_model)
    # Cast weight to fp32 once outside the kernel (no per-step cast / re-DMA cost).
    w2d = weight.astype(jnp.float32).reshape(1, d_model)

    itemsize = jnp.dtype(x.dtype).itemsize
    # Minimum sublane multiple for the I/O dtype: 8 (fp32), 16 (bf16), 32 (int8/fp8).
    sub = max(8, 32 // itemsize)

    vmem_cap, num_cores = _tpu_budget()
    # Scoped-VMEM ceiling: ~72% of physical VMEM (≈46 MiB on v7x, ≈92 MiB on v5e/v6e).
    vmem_limit_cap = max(32 * _MiB, int(0.72 * vmem_cap))
    # Total double-buffered I/O budget (2 in + 2 out buffers): half the ceiling.
    io_budget = min(48 * _MiB, max(16 * _MiB, vmem_limit_cap // 2))

    per_row_io = d_model * itemsize
    if row_tile is None:
        # Bytes-based block sizing: target a large per-buffer block (2-12 MiB)
        # so the HBM DMA pipeline is not per-step-overhead dominated.
        per_buffer_target = min(12 * _MiB, max(2 * _MiB, io_budget // 4))
        row_tile = max(sub, per_buffer_target // per_row_io)
    row_tile = _round_up(max(int(row_tile), 1), sub)
    # Never use a tile (much) larger than the problem itself.
    row_tile = min(row_tile, _round_up(rows, sub))
    # On multi-TensorCore chips (v7x), keep >=2*num_cores grid steps so the
    # "parallel" row axis is actually sharded across cores.
    if num_cores > 1 and rows >= 2 * num_cores * sub:
        min_steps = 2 * num_cores
        split_tile = max(sub, _round_up(_cdiv(rows, min_steps), sub))
        row_tile = min(row_tile, split_tile)

    grid = (pl.cdiv(rows, row_tile),)   # ragged last block is masked by Pallas

    # Scoped-VMEM limit: 4 I/O buffers (I/O dtype) + fp32 transients + slack,
    # capped by the generation-aware ceiling.
    io_bytes = 4 * row_tile * d_model * itemsize + 2 * d_model * 4
    f32_tmp_bytes = 2 * row_tile * d_model * 4
    vmem_limit = int(min(vmem_limit_cap,
                         max(16 * _MiB, io_bytes + f32_tmp_bytes + (1 << 20))))

    # NOTE: blocks are sized >=2 MiB whenever the problem allows, so the default
    # double-buffering (pl.Buffered(2)) already hides DMA latency; deeper
    # buffering is only worth it for tiny blocks and would cost VMEM on v7x.
    out = pl.pallas_call(
        functools.partial(_rmsnorm_kernel, eps=float(eps), inv_d=1.0 / d_model),
        out_shape=jax.ShapeDtypeStruct((rows, d_model), x.dtype),
        grid_spec=pl.GridSpec(
            grid=grid,
            in_specs=[
                pl.BlockSpec((row_tile, d_model), lambda i: (i, 0)),
                # Constant block index -> fetched once, not re-streamed per step.
                pl.BlockSpec((1, d_model), lambda i: (0, 0)),
            ],
            out_specs=pl.BlockSpec((row_tile, d_model), lambda i: (i, 0)),
        ),
        compiler_params=pltpu.CompilerParams(
            dimension_semantics=("parallel",),   # shards rows over v7x's 2 TCs
            vmem_limit_bytes=vmem_limit,
        ),
    )(x2d, w2d)

    return out.reshape(orig_shape)


def rmsnorm_ref(x, weight, eps=1e-5):
    x32 = x.astype(jnp.float32)
    inv = jax.lax.rsqrt(jnp.mean(x32 * x32, axis=-1, keepdims=True) + eps)
    return (x32 * inv * weight.astype(jnp.float32)).astype(x.dtype)


if __name__ == "__main__":
    key = jax.random.PRNGKey(0)

    # Small shape consistent with the module's forward: (batch, seq, d_model).
    batch, seq, d_model = 2, 8, 32
    x = jax.random.normal(key, (batch, seq, d_model), dtype=jnp.float32)
    # Parameter init matches nn.Parameter(torch.ones(d_model)).
    weight = jnp.ones((d_model,), dtype=jnp.float32)

    out = rmsnorm(x, weight, eps=1e-5)
    out = jax.block_until_ready(out)
    ref = rmsnorm_ref(x, weight, eps=1e-5)
    assert out.shape == x.shape
    assert jnp.allclose(out, ref, atol=1e-5, rtol=1e-5), "mismatch vs reference"

    # Multi-step grid with a ragged (masked) last block: rows=15 > row_tile=8 and
    # not a multiple of it — exercises the no-pad masked-last-block path.
    key2 = jax.random.PRNGKey(1)
    x2 = jax.random.normal(key2, (3, 5, d_model), dtype=jnp.float32)
    out2 = jax.block_until_ready(rmsnorm(x2, weight, eps=1e-5, row_tile=8))
    ref2 = rmsnorm_ref(x2, weight, eps=1e-5)
    assert jnp.allclose(out2, ref2, atol=1e-5, rtol=1e-5), "mismatch (ragged rows)"

    # bf16 I/O path (exercises the fused re-read/upcast output path).
    x3 = jax.random.normal(jax.random.PRNGKey(2), (2, 8, d_model), dtype=jnp.bfloat16)
    out3 = jax.block_until_ready(rmsnorm(x3, weight, eps=1e-5))
    ref3 = rmsnorm_ref(x3, weight, eps=1e-5)
    assert jnp.allclose(out3.astype(jnp.float32), ref3.astype(jnp.float32),
                        atol=3e-2, rtol=3e-2), "mismatch (bf16)"

    print("KERNEL_OK")
</pallas_src>

<mosaic_0001>
module attributes {stable_mosaic.version = 11 : i64} {
  func.func @_rmsnorm_kernel(%arg0: i32, %arg1: memref<16x32xf32, #tpu.memory_space<vmem>>, %arg2: memref<1x32xf32, #tpu.memory_space<vmem>>, %arg3: memref<16x32xf32, #tpu.memory_space<vmem>>) attributes {dimension_semantics = [#tpu.dimension_semantics<parallel>], iteration_bounds = array<i64: 1>, scalar_prefetch = 0 : i64, scratch_operands = 0 : i64, tpu.core_type = #tpu.core_type<tc>, window_params = [{transform_indices = @transform_0, window_bounds = array<i64: 16, 32>}, {pipeline_mode = #tpu.pipeline_mode<synchronous>, transform_indices = @transform_1, window_bounds = array<i64: 1, 32>}, {transform_indices = @transform_2, window_bounds = array<i64: 16, 32>}]} {
    %c0 = arith.constant 0 : index
    %c0_0 = arith.constant 0 : index
    %0 = vector.load %arg1[%c0, %c0_0] : memref<16x32xf32, #tpu.memory_space<vmem>>, vector<16x32xf32>
    %1 = arith.mulf %0, %0 : vector<16x32xf32>
    %cst = arith.constant dense<0.000000e+00> : vector<16xf32>
    %2 = vector.multi_reduction <add>, %1, %cst [1] : vector<16x32xf32> to vector<16xf32>
    %3 = vector.shape_cast %2 : vector<16xf32> to vector<16x1xf32>
    %cst_1 = arith.constant 3.125000e-02 : f32
    %4 = vector.broadcast %cst_1 : f32 to vector<16x1xf32>
    %5 = arith.mulf %3, %4 : vector<16x1xf32>
    %cst_2 = arith.constant 9.99999974E-6 : f32
    %6 = vector.broadcast %cst_2 : f32 to vector<16x1xf32>
    %7 = arith.addf %5, %6 : vector<16x1xf32>
    %8 = math.rsqrt %7 : vector<16x1xf32>
    %c0_3 = arith.constant 0 : index
    %c0_4 = arith.constant 0 : index
    %9 = vector.load %arg1[%c0_3, %c0_4] : memref<16x32xf32, #tpu.memory_space<vmem>>, vector<16x32xf32>
    %10 = vector.broadcast %8 : vector<16x1xf32> to vector<16x32xf32>
    %11 = arith.mulf %9, %10 : vector<16x32xf32>
    %c0_5 = arith.constant 0 : index
    %c0_6 = arith.constant 0 : index
    %12 = vector.load %arg2[%c0_5, %c0_6] : memref<1x32xf32, #tpu.memory_space<vmem>>, vector<1x32xf32>
    %13 = vector.broadcast %12 : vector<1x32xf32> to vector<16x32xf32>
    %14 = arith.mulf %11, %13 : vector<16x32xf32>
    %c0_7 = arith.constant 0 : index
    %c0_8 = arith.constant 0 : index
    %15 = vector.load %arg3[%c0_7, %c0_8] : memref<16x32xf32, #tpu.memory_space<vmem>>, vector<16x32xf32>
    tpu.vector_store %arg3[%c0_7, %c0_8], %14 {strides = array<i32>} : memref<16x32xf32, #tpu.memory_space<vmem>>, vector<16x32xf32>,
    return
  }
  func.func @transform_0(%arg0: i32) -> (i32, i32) {
    %c0_i32 = arith.constant 0 : i32
    %c0_i32_0 = arith.constant 0 : i32
    return %arg0, %c0_i32 : i32, i32
  }
  func.func @transform_1(%arg0: i32) -> (i32, i32) {
    %c0_i32 = arith.constant 0 : i32
    %c0_i32_0 = arith.constant 0 : i32
    %c0_i32_1 = arith.constant 0 : i32
    return %c0_i32, %c0_i32_0 : i32, i32
  }
  func.func @transform_2(%arg0: i32) -> (i32, i32) {
    %c0_i32 = arith.constant 0 : i32
    %c0_i32_0 = arith.constant 0 : i32
    return %arg0, %c0_i32 : i32, i32
  }
}

</mosaic_0001>

<bundles_post_ra>
// kernel: tpu_custom_call.1
= control target key start
LH: loop header
LB: loop body
LE: loop exit
PB: predicated region body
PF: predicated region fallthrough
CT: control target
= control target key end

     0   :  { %7 = vsyncpa [#allocation3], 0  ;;  %s186_s0 = inlined_call_operand.hbm [shape: f32[16,32], index: 0, kind: input, shape index: {}]   ;;  %s187_s1 = inlined_call_operand.vmem [shape: f32[1,32], index: 1, kind: input, shape index: {}]   ;;  %s188_s2 = inlined_call_operand.hbm [shape: f32[16,32], index: 2, kind: output, shape index: {}]  }
   0x1   :  { %8 = vsyncpa [#allocation4], 0  ;;  %s130_s9 = smov [#allocation2]   ;;  %s82_s13 = scalar_lea.hbm %s186_s0, 256 }
   0x2   :  { %s14_s10 = sshll.u32 %s130_s9, 4  ;;  %p83_p0 = scmp.ne.s32.totalorder %s186_s0, %s82_s13  ;;  %s15_s10 = int_to_ptr.vmem [resolvable:$true] %s14_s10 }
   0x3   :  { %p86_p1 = scmp.lt.u32.totalorder %s82_s13, %s186_s0 }
   0x5   :  { %p88_p2 = pnand %p86_p1, %p83_p0 }
   0x7   :  { %91 = shalt.err (!%p88_p2)
}
   0x8   :  { %s92_s18 = scalar_lea.vmem %s15_s10, 256  ;;  %p97_p4 = scmp.lt.s32.totalorder %s15_s10, %s15_s10 }
   0x9   :  { %p93_p3 = scmp.ne.s32.totalorder %s15_s10, %s92_s18  ;;  %p98_p5 = scmp.lt.s32.totalorder %s92_s18, %s92_s18 }
   0xb   :  { %p99_p6 = por %p98_p5, %p97_p4 }
   0xd   :  { %p100_p7 = pnand %p99_p6, %p93_p3 }
   0xf   :  { %103 = shalt.err (!%p100_p7)
}
  0x10   :  { %s131_s19 = smov 128   ;;  %s132_s20 = smov 8  }
  0x11   :  { %20 = dma.hbm_to_vmem [thread:$0]  %s186_s0, 256, %s15_s10, [#allocation3], %s131_s19, %s131_s19, %s132_s20  }
  0x12   :  { %126 = dma.done.wait [#allocation3], 256  }
  0x13   :  { %127 = vsyncadd [#allocation3], 4294967040  ;;  %v26_v0 = vld [vmem:[#allocation2] sm:$0xff]  ;;  %vm30_vm0 = vcmask 261120   ;;  %v27_v1 = vld [vmem:[#allocation2 + $0x8] sm:$0xff]  ;;  %s133_s24 = smov [#allocation5]  }
  0x14   :  { %v28_v2 = vmul.f32 %v26_v0, %v26_v0  ;;  %v29_v3 = vmul.f32 %v27_v1, %v27_v1  ;;  %v73_v13 = vld [vmem:[%s187_s1] ss:$0 sm:$0xff]  ;;  %s61_s25 = sshll.u32 %s133_s24, 4  ;;  %s62_s25 = int_to_ptr.vmem [resolvable:$true] %s61_s25 }
  0x15   :  { %s104_s26 = scalar_lea.vmem %s62_s25, 256  ;;  %p109_p9 = scmp.lt.s32.totalorder %s62_s25, %s62_s25 }
  0x16   :  { %v31_v4 = vsel %vm30_vm0, %v28_v2, 0.0  ;;  %v34_v5 = vsel %vm30_vm0, %v29_v3, 0.0  ;;  %p105_p8 = scmp.ne.s32.totalorder %s62_s25, %s104_s26  ;;  %p110_p10 = scmp.lt.s32.totalorder %s104_s26, %s104_s26 }
  0x17   :  { %32 = vadd.xlane.f32.xlu0 %v31_v4 }
  0x18   :  { %p111_p11 = por %p110_p10, %p109_p9 }
  0x1a   :  { %p112_p12 = pnand %p111_p11, %p105_p8 }
  0x1b   :  { %35 = vadd.xlane.f32.xlu0 %v34_v5 }
  0xa4   :  { %v33_v6 = vpop.xlane.xlu0 %32 }
  0xa5   :  { %v37_v7 = vmul.f32 0.03125, %v33_v6 }
  0xa7   :  { %v39_v8 = vadd.f32 1e-05, %v37_v7 }
  0xa8   :  { %v36_v9 = vpop.xlane.xlu0 %35 }
  0xa9   :  { %78 = vrsqrt.f32 %v39_v8  ;;  %v38_v10 = vmul.f32 0.03125, %v36_v9 }
  0xab   :  { %v40_v11 = vadd.f32 1e-05, %v38_v10 }
  0xad   :  { %80 = vrsqrt.f32 %v40_v11 }
  0xb3   :  { %v79_v12 = vpop.eup %78 }
  0xb4   :  { %v43_v14 = vmul.f32 %v79_v12, %v26_v0 }
  0xb6   :  { %v52_v15 = vmul.f32 %v73_v13, %v43_v14 }
  0xb7   :  { %v81_v16 = vpop.eup %80 }
  0xb8   :  { %v44_v17 = vmul.f32 %v81_v16, %v27_v1  ;;  %54 = vst.msk [vmem:[#allocation5] sm:$0xff] %vm30_vm0, %v52_v15 }
  0xba   :  { %v53_v18 = vmul.f32 %v73_v13, %v44_v17 }
  0xbc   :  { %55 = vst.msk [vmem:[#allocation5 + $0x8] sm:$0xff] %vm30_vm0, %v53_v18 }
  0xbd   :  { %115 = shalt.err (!%p112_p12)
}
  0xbe   :  { %s116_s28 = scalar_lea.hbm %s188_s2, 256 }
  0xbf   :  { %p117_p13 = scmp.ne.s32.totalorder %s188_s2, %s116_s28  ;;  %p120_p0 = scmp.lt.u32.totalorder %s116_s28, %s188_s2 }
  0xc1   :  { %p122_p1 = pnand %p120_p0, %p117_p13 }
  0xc3   :  { %125 = shalt.err (!%p122_p1)
}
  0xc4   :  { %67 = dma.vmem_to_hbm [thread:$0]  %s62_s25, 256, %s188_s2, [#allocation4], %s131_s19, %s131_s19, %s132_s20  }
  0xc5   :  { %128 = dma.done.wait [#allocation4], 256  }
  0xc6   :  { %129 = vsyncadd [#allocation4], 4294967040 }
  0xc7   :  { %71 = vsyncpa [#allocation3], 1 }
  0xc8   :  { %72 = vsyncpa [#allocation4], 1 }

</bundles_post_ra>
